<compile_context>
chip_gen: v7x
topology: tpu7x:2x2x1
jax: 0.10.0
libtpu: 0.0.40
codegen_flags: <defaults>
</compile_context>

<pallas_src>
import jax
import jax.numpy as jnp
from jax.experimental import pallas as pl
from jax.experimental.pallas import tpu as pltpu

SUBLANE = 8
LANE = 128
VREG_V = SUBLANE * LANE          # 1024 vertices per (8,128) f32 vreg slab
MAX_TILE_V = 64 * 1024           # vertices per grid step (<= 768 KiB per buffer)


def _round_up(x, m):
    return ((x + m - 1) // m) * m


def _num_tensorcores():
    """Best-effort TensorCore count (2 on v7x, 1 on v5e/v6e). Falls back to 1."""
    try:
        info = pltpu.get_tpu_info()
    except Exception:
        return 1
    for name in ("num_cores", "core_count", "num_tensorcores",
                 "num_cores_per_chip", "tensorcores_per_chip"):
        n = getattr(info, name, None)
        if isinstance(n, int) and 1 <= n <= 8:
            return n
    return 1


def _vertex_tiling(v, batch, num_tc):
    """Pick (tile_v, vpad): multiples of 1024 (sublane-group axis stays /8-aligned)."""
    vpad = _round_up(max(v, 1), VREG_V)
    n_tiles = -(-vpad // MAX_TILE_V)
    # Only force a >=num_tc-way split when there are actually multiple TCs (v7x).
    if batch * n_tiles < num_tc and vpad >= num_tc * VREG_V:
        n_tiles = num_tc
    tile_v = _round_up(-(-vpad // n_tiles), VREG_V)
    n_tiles = -(-vpad // tile_v)
    return tile_v, tile_v * n_tiles


def _batch_tiling(batch, tile_v, n_vtiles, num_tc):
    """Fuse TB batch rows per grid step when V is small (amortize per-step overhead)."""
    if n_vtiles > 1 or batch <= 1:
        return 1
    best = 1
    for cand in range(1, batch + 1):
        if batch % cand:
            continue
        if cand * tile_v > MAX_TILE_V:
            continue
        if (batch // cand) * n_vtiles < max(1, num_tc):
            continue  # keep both v7x TCs fed
        best = cand
    return best


def _make_kernel(tb, ts, chunk, projective):
    """Kernel for blocks (tb, 3, ts, 128); chunk divides ts (both multiples of 8)."""
    n_chunks = ts // chunk

    def kernel(m_ref, v_ref, o_ref):
        bstep = pl.program_id(0)

        for lb in range(tb):                     # static unroll over fused batch rows
            b = bstep * tb + lb

            def mm(r, c):                        # scalar read from SMEM
                return m_ref[b, 4 * r + c]

            # Read the 12 affine coefficients ONCE per (step, batch row),
            # outside the chunk loop (broadcasts fuse into the FMAs below).
            m00, m01, m02 = mm(0, 0), mm(0, 1), mm(0, 2)
            m10, m11, m12 = mm(1, 0), mm(1, 1), mm(1, 2)
            m20, m21, m22 = mm(2, 0), mm(2, 1), mm(2, 2)
            m30, m31, m32 = mm(3, 0), mm(3, 1), mm(3, 2)
            if projective:
                m03, m13, m23, m33 = mm(0, 3), mm(1, 3), mm(2, 3), mm(3, 3)

            def do_chunk(sl, lb=lb):
                x = v_ref[lb, 0, sl, :]          # (chunk, 128) — dense vregs
                y = v_ref[lb, 1, sl, :]
                z = v_ref[lb, 2, sl, :]
                # Row-vector transform with implicit homogeneous w = 1.
                ox = x * m00 + y * m10 + z * m20 + m30
                oy = x * m01 + y * m11 + z * m21 + m31
                oz = x * m02 + y * m12 + z * m22 + m32
                if projective:
                    ow = x * m03 + y * m13 + z * m23 + m33
                    eps = jnp.float32(1e-8)      # pytorch3d-style denom clamp
                    ow = jnp.where(jnp.abs(ow) < eps,
                                   jnp.where(ow >= 0, eps, -eps), ow)
                    inv_w = 1.0 / ow             # exact divide (no approx error)
                    ox, oy, oz = ox * inv_w, oy * inv_w, oz * inv_w
                o_ref[lb, 0, sl, :] = ox
                o_ref[lb, 1, sl, :] = oy
                o_ref[lb, 2, sl, :] = oz

            if n_chunks == 1:
                do_chunk(slice(None))
            else:
                @pl.loop(0, n_chunks)
                def _(c, do_chunk=do_chunk):
                    off = pl.multiple_of(c * chunk, chunk)
                    do_chunk(pl.ds(off, chunk))

    return kernel


def _compose_transform(global_mat, trans, S):
    """Transform3d(matrix=global_mat^T).translate(trans).scale(S) -> (B, 4, 4)."""
    B = trans.shape[0]
    m0 = jnp.transpose(global_mat.reshape(-1, 4, 4), (0, 2, 1)).astype(jnp.float32)
    # Translate: identity with translation in the last ROW (pytorch3d convention).
    t_mat = jnp.broadcast_to(jnp.eye(4, dtype=jnp.float32), (B, 4, 4))
    t_mat = t_mat.at[:, 3, 0:3].set(trans.astype(jnp.float32))
    # Uniform scale per batch: diag(s, s, s, 1).
    s = jnp.broadcast_to(jnp.asarray(S, jnp.float32).ravel(), (B,))
    diag = jnp.stack([s, s, s, jnp.ones_like(s)], axis=-1)               # (B, 4)
    s_mat = jnp.eye(4, dtype=jnp.float32)[None] * diag[:, None, :]
    # Composition order: self @ translate @ scale (left-to-right on row vectors).
    return m0 @ t_mat @ s_mat


def render_smpl_transform_cm(verts_cm, trans, global_mat, S, projective=False):
    """Primary (hot-path) API: coordinate-major verts.

    verts_cm: (B, 3, V) f32, trans: (B, 3), global_mat: (B, 16), S: (B,) or scalar.
    Returns (B, 3, V) camera-space vertices.  No transpose round-trip.
    """
    B, three, V = verts_cm.shape
    assert three == 3
    composed = _compose_transform(global_mat, trans, S).reshape(B, 16)   # (B, 16)

    num_tc = _num_tensorcores()
    tile_v, vpad = _vertex_tiling(V, B, num_tc)
    n_vtiles = vpad // tile_v
    tb = _batch_tiling(B, tile_v, n_vtiles, num_tc)

    x = verts_cm.astype(jnp.float32)
    if vpad != V:
        x = jnp.pad(x, ((0, 0), (0, 0), (0, vpad - V)))
    x = x.reshape(B, 3, vpad // LANE, LANE)      # free view: sublane-dense layout

    ts = tile_v // LANE                          # sublane groups per tile (mult. of 8)
    chunk = max(c for c in (32, 16, 8) if ts % c == 0)
    kernel = _make_kernel(tb, ts, chunk, projective)

    grid = (B // tb, n_vtiles)
    out = pl.pallas_call(
        kernel,
        out_shape=jax.ShapeDtypeStruct((B, 3, vpad // LANE, LANE), jnp.float32),
        grid=grid,
        in_specs=[
            pl.BlockSpec(memory_space=pltpu.MemorySpace.SMEM),            # (B, 16)
            pl.BlockSpec((tb, 3, ts, LANE), lambda bi, vi: (bi, 0, vi, 0)),
        ],
        out_specs=pl.BlockSpec((tb, 3, ts, LANE), lambda bi, vi: (bi, 0, vi, 0)),
        compiler_params=pltpu.CompilerParams(
            dimension_semantics=("parallel", "parallel")),
    )(composed, x)

    out = out.reshape(B, 3, vpad)
    return out[:, :, :V]


def render_smpl_transform(verts, trans, global_mat, S, projective=False):
    """Drop-in (B, V, 3) adapter.  NOTE: the two transposes below are full HBM
    read+write passes emitted by XLA — prefer render_smpl_transform_cm with
    coordinate-major data when the surrounding pipeline allows it."""
    verts_cm = jnp.transpose(verts, (0, 2, 1))
    out_cm = render_smpl_transform_cm(verts_cm, trans, global_mat, S, projective)
    return jnp.transpose(out_cm, (0, 2, 1))


def _reference_transform(verts, trans, global_mat, S):
    composed = _compose_transform(global_mat, trans, S)
    B, V, _ = verts.shape
    ph = jnp.concatenate(
        [verts.astype(jnp.float32), jnp.ones((B, V, 1), jnp.float32)], axis=-1)
    out = jnp.einsum("bvi,bij->bvj", ph, composed)
    return out[..., :3] / out[..., 3:4]


if __name__ == "__main__":
    key = jax.random.PRNGKey(0)
    k_v, k_r, k_t, k_tr, k_s = jax.random.split(key, 5)

    B, V = 2, 100  # small SMPL-like vertex count (padded to 1024 inside the wrapper)

    verts = jax.random.normal(k_v, (B, V, 3), jnp.float32)

    # Deterministic "global_mat": column-vector-convention affine (last row [0,0,0,1]),
    # so its transpose is a valid pytorch3d row-vector transform.
    rot = jnp.eye(3, dtype=jnp.float32)[None] + 0.1 * jax.random.normal(k_r, (B, 3, 3))
    gtrans = jax.random.normal(k_t, (B, 3), jnp.float32)
    gmat = jnp.zeros((B, 4, 4), jnp.float32)
    gmat = gmat.at[:, :3, :3].set(rot)
    gmat = gmat.at[:, :3, 3].set(gtrans)
    gmat = gmat.at[:, 3, 3].set(1.0)
    global_mat = gmat.reshape(B, 16)  # module does global_mat.view(-1, 4, 4)

    trans = jax.random.normal(k_tr, (B, 3), jnp.float32)
    S = 1.0 + 0.5 * jax.random.uniform(k_s, (B,), jnp.float32)

    ref = _reference_transform(verts, trans, global_mat, S)

    # Primary coordinate-major path (no transpose round-trip in the hot path).
    verts_cm = jnp.transpose(verts, (0, 2, 1))
    out_cm = render_smpl_transform_cm(verts_cm, trans, global_mat, S)
    jax.block_until_ready(out_cm)
    got_cm = jnp.transpose(out_cm, (0, 2, 1))
    if not jnp.allclose(got_cm, ref, atol=1e-4, rtol=1e-4):
        raise AssertionError("coordinate-major Pallas kernel does not match reference")

    # Drop-in (B, V, 3) adapter.
    got = render_smpl_transform(verts, trans, global_mat, S)
    jax.block_until_ready(got)
    if not jnp.allclose(got, ref, atol=1e-4, rtol=1e-4):
        raise AssertionError("(B,V,3) adapter does not match reference")

    print("KERNEL_OK")
</pallas_src>

<mosaic_0001>
module attributes {stable_mosaic.version = 11 : i64} {
  func.func @kernel(%arg0: i32, %arg1: i32, %arg2: memref<2x16xf32, #tpu.memory_space<smem>>, %arg3: memref<2x3x8x128xf32, #tpu.memory_space<vmem>>, %arg4: memref<2x3x8x128xf32, #tpu.memory_space<vmem>>) attributes {dimension_semantics = [#tpu.dimension_semantics<parallel>, #tpu.dimension_semantics<parallel>], iteration_bounds = array<i64: 1, 1>, scalar_prefetch = 0 : i64, scratch_operands = 0 : i64, tpu.core_type = #tpu.core_type<tc>, window_params = [{transform_indices = @transform_0, window_bounds = array<i64: 2, 16>}, {transform_indices = @transform_1, window_bounds = array<i64: 2, 3, 8, 128>}, {transform_indices = @transform_2, window_bounds = array<i64: 2, 3, 8, 128>}]} {
    %c2_i32 = arith.constant 2 : i32
    %0 = arith.muli %arg0, %c2_i32 : i32
    %c0_i32 = arith.constant 0 : i32
    %1 = arith.addi %0, %c0_i32 : i32
    %2 = arith.index_cast %1 : i32 to index
    %c0 = arith.constant 0 : index
    %3 = memref.load %arg2[%2, %c0] : memref<2x16xf32, #tpu.memory_space<smem>>
    %4 = arith.index_cast %1 : i32 to index
    %c1 = arith.constant 1 : index
    %5 = memref.load %arg2[%4, %c1] : memref<2x16xf32, #tpu.memory_space<smem>>
    %6 = arith.index_cast %1 : i32 to index
    %c2 = arith.constant 2 : index
    %7 = memref.load %arg2[%6, %c2] : memref<2x16xf32, #tpu.memory_space<smem>>
    %8 = arith.index_cast %1 : i32 to index
    %c4 = arith.constant 4 : index
    %9 = memref.load %arg2[%8, %c4] : memref<2x16xf32, #tpu.memory_space<smem>>
    %10 = arith.index_cast %1 : i32 to index
    %c5 = arith.constant 5 : index
    %11 = memref.load %arg2[%10, %c5] : memref<2x16xf32, #tpu.memory_space<smem>>
    %12 = arith.index_cast %1 : i32 to index
    %c6 = arith.constant 6 : index
    %13 = memref.load %arg2[%12, %c6] : memref<2x16xf32, #tpu.memory_space<smem>>
    %14 = arith.index_cast %1 : i32 to index
    %c8 = arith.constant 8 : index
    %15 = memref.load %arg2[%14, %c8] : memref<2x16xf32, #tpu.memory_space<smem>>
    %16 = arith.index_cast %1 : i32 to index
    %c9 = arith.constant 9 : index
    %17 = memref.load %arg2[%16, %c9] : memref<2x16xf32, #tpu.memory_space<smem>>
    %18 = arith.index_cast %1 : i32 to index
    %c10 = arith.constant 10 : index
    %19 = memref.load %arg2[%18, %c10] : memref<2x16xf32, #tpu.memory_space<smem>>
    %20 = arith.index_cast %1 : i32 to index
    %c12 = arith.constant 12 : index
    %21 = memref.load %arg2[%20, %c12] : memref<2x16xf32, #tpu.memory_space<smem>>
    %22 = arith.index_cast %1 : i32 to index
    %c13 = arith.constant 13 : index
    %23 = memref.load %arg2[%22, %c13] : memref<2x16xf32, #tpu.memory_space<smem>>
    %24 = arith.index_cast %1 : i32 to index
    %c14 = arith.constant 14 : index
    %25 = memref.load %arg2[%24, %c14] : memref<2x16xf32, #tpu.memory_space<smem>>
    %c0_0 = arith.constant 0 : index
    %c0_1 = arith.constant 0 : index
    %c0_2 = arith.constant 0 : index
    %c0_3 = arith.constant 0 : index
    %26 = vector.load %arg3[%c0_0, %c0_1, %c0_2, %c0_3] : memref<2x3x8x128xf32, #tpu.memory_space<vmem>>, vector<1x1x8x128xf32>
    %27 = vector.shape_cast %26 : vector<1x1x8x128xf32> to vector<8x128xf32>
    %c0_4 = arith.constant 0 : index
    %c1_5 = arith.constant 1 : index
    %c0_6 = arith.constant 0 : index
    %c0_7 = arith.constant 0 : index
    %28 = vector.load %arg3[%c0_4, %c1_5, %c0_6, %c0_7] : memref<2x3x8x128xf32, #tpu.memory_space<vmem>>, vector<1x1x8x128xf32>
    %29 = vector.shape_cast %28 : vector<1x1x8x128xf32> to vector<8x128xf32>
    %c0_8 = arith.constant 0 : index
    %c2_9 = arith.constant 2 : index
    %c0_10 = arith.constant 0 : index
    %c0_11 = arith.constant 0 : index
    %30 = vector.load %arg3[%c0_8, %c2_9, %c0_10, %c0_11] : memref<2x3x8x128xf32, #tpu.memory_space<vmem>>, vector<1x1x8x128xf32>
    %31 = vector.shape_cast %30 : vector<1x1x8x128xf32> to vector<8x128xf32>
    %32 = vector.broadcast %3 : f32 to vector<8x128xf32>
    %33 = arith.mulf %27, %32 : vector<8x128xf32>
    %34 = vector.broadcast %9 : f32 to vector<8x128xf32>
    %35 = arith.mulf %29, %34 : vector<8x128xf32>
    %36 = arith.addf %33, %35 : vector<8x128xf32>
    %37 = vector.broadcast %15 : f32 to vector<8x128xf32>
    %38 = arith.mulf %31, %37 : vector<8x128xf32>
    %39 = arith.addf %36, %38 : vector<8x128xf32>
    %40 = vector.broadcast %21 : f32 to vector<8x128xf32>
    %41 = arith.addf %39, %40 : vector<8x128xf32>
    %42 = vector.broadcast %5 : f32 to vector<8x128xf32>
    %43 = arith.mulf %27, %42 : vector<8x128xf32>
    %44 = vector.broadcast %11 : f32 to vector<8x128xf32>
    %45 = arith.mulf %29, %44 : vector<8x128xf32>
    %46 = arith.addf %43, %45 : vector<8x128xf32>
    %47 = vector.broadcast %17 : f32 to vector<8x128xf32>
    %48 = arith.mulf %31, %47 : vector<8x128xf32>
    %49 = arith.addf %46, %48 : vector<8x128xf32>
    %50 = vector.broadcast %23 : f32 to vector<8x128xf32>
    %51 = arith.addf %49, %50 : vector<8x128xf32>
    %52 = vector.broadcast %7 : f32 to vector<8x128xf32>
    %53 = arith.mulf %27, %52 : vector<8x128xf32>
    %54 = vector.broadcast %13 : f32 to vector<8x128xf32>
    %55 = arith.mulf %29, %54 : vector<8x128xf32>
    %56 = arith.addf %53, %55 : vector<8x128xf32>
    %57 = vector.broadcast %19 : f32 to vector<8x128xf32>
    %58 = arith.mulf %31, %57 : vector<8x128xf32>
    %59 = arith.addf %56, %58 : vector<8x128xf32>
    %60 = vector.broadcast %25 : f32 to vector<8x128xf32>
    %61 = arith.addf %59, %60 : vector<8x128xf32>
    %c0_12 = arith.constant 0 : index
    %c0_13 = arith.constant 0 : index
    %c0_14 = arith.constant 0 : index
    %c0_15 = arith.constant 0 : index
    %62 = vector.load %arg4[%c0_12, %c0_13, %c0_14, %c0_15] : memref<2x3x8x128xf32, #tpu.memory_space<vmem>>, vector<1x1x8x128xf32>
    %63 = vector.shape_cast %62 : vector<1x1x8x128xf32> to vector<8x128xf32>
    %64 = vector.shape_cast %41 : vector<8x128xf32> to vector<1x1x8x128xf32>
    tpu.vector_store %arg4[%c0_12, %c0_13, %c0_14, %c0_15], %64 {strides = array<i32>} : memref<2x3x8x128xf32, #tpu.memory_space<vmem>>, vector<1x1x8x128xf32>,
    %c0_16 = arith.constant 0 : index
    %c1_17 = arith.constant 1 : index
    %c0_18 = arith.constant 0 : index
    %c0_19 = arith.constant 0 : index
    %65 = vector.load %arg4[%c0_16, %c1_17, %c0_18, %c0_19] : memref<2x3x8x128xf32, #tpu.memory_space<vmem>>, vector<1x1x8x128xf32>
    %66 = vector.shape_cast %65 : vector<1x1x8x128xf32> to vector<8x128xf32>
    %67 = vector.shape_cast %51 : vector<8x128xf32> to vector<1x1x8x128xf32>
    tpu.vector_store %arg4[%c0_16, %c1_17, %c0_18, %c0_19], %67 {strides = array<i32>} : memref<2x3x8x128xf32, #tpu.memory_space<vmem>>, vector<1x1x8x128xf32>,
    %c0_20 = arith.constant 0 : index
    %c2_21 = arith.constant 2 : index
    %c0_22 = arith.constant 0 : index
    %c0_23 = arith.constant 0 : index
    %68 = vector.load %arg4[%c0_20, %c2_21, %c0_22, %c0_23] : memref<2x3x8x128xf32, #tpu.memory_space<vmem>>, vector<1x1x8x128xf32>
    %69 = vector.shape_cast %68 : vector<1x1x8x128xf32> to vector<8x128xf32>
    %70 = vector.shape_cast %61 : vector<8x128xf32> to vector<1x1x8x128xf32>
    tpu.vector_store %arg4[%c0_20, %c2_21, %c0_22, %c0_23], %70 {strides = array<i32>} : memref<2x3x8x128xf32, #tpu.memory_space<vmem>>, vector<1x1x8x128xf32>,
    %c2_i32_24 = arith.constant 2 : i32
    %71 = arith.muli %arg0, %c2_i32_24 : i32
    %c1_i32 = arith.constant 1 : i32
    %72 = arith.addi %71, %c1_i32 : i32
    %73 = arith.index_cast %72 : i32 to index
    %c0_25 = arith.constant 0 : index
    %74 = memref.load %arg2[%73, %c0_25] : memref<2x16xf32, #tpu.memory_space<smem>>
    %75 = arith.index_cast %72 : i32 to index
    %c1_26 = arith.constant 1 : index
    %76 = memref.load %arg2[%75, %c1_26] : memref<2x16xf32, #tpu.memory_space<smem>>
    %77 = arith.index_cast %72 : i32 to index
    %c2_27 = arith.constant 2 : index
    %78 = memref.load %arg2[%77, %c2_27] : memref<2x16xf32, #tpu.memory_space<smem>>
    %79 = arith.index_cast %72 : i32 to index
    %c4_28 = arith.constant 4 : index
    %80 = memref.load %arg2[%79, %c4_28] : memref<2x16xf32, #tpu.memory_space<smem>>
    %81 = arith.index_cast %72 : i32 to index
    %c5_29 = arith.constant 5 : index
    %82 = memref.load %arg2[%81, %c5_29] : memref<2x16xf32, #tpu.memory_space<smem>>
    %83 = arith.index_cast %72 : i32 to index
    %c6_30 = arith.constant 6 : index
    %84 = memref.load %arg2[%83, %c6_30] : memref<2x16xf32, #tpu.memory_space<smem>>
    %85 = arith.index_cast %72 : i32 to index
    %c8_31 = arith.constant 8 : index
    %86 = memref.load %arg2[%85, %c8_31] : memref<2x16xf32, #tpu.memory_space<smem>>
    %87 = arith.index_cast %72 : i32 to index
    %c9_32 = arith.constant 9 : index
    %88 = memref.load %arg2[%87, %c9_32] : memref<2x16xf32, #tpu.memory_space<smem>>
    %89 = arith.index_cast %72 : i32 to index
    %c10_33 = arith.constant 10 : index
    %90 = memref.load %arg2[%89, %c10_33] : memref<2x16xf32, #tpu.memory_space<smem>>
    %91 = arith.index_cast %72 : i32 to index
    %c12_34 = arith.constant 12 : index
    %92 = memref.load %arg2[%91, %c12_34] : memref<2x16xf32, #tpu.memory_space<smem>>
    %93 = arith.index_cast %72 : i32 to index
    %c13_35 = arith.constant 13 : index
    %94 = memref.load %arg2[%93, %c13_35] : memref<2x16xf32, #tpu.memory_space<smem>>
    %95 = arith.index_cast %72 : i32 to index
    %c14_36 = arith.constant 14 : index
    %96 = memref.load %arg2[%95, %c14_36] : memref<2x16xf32, #tpu.memory_space<smem>>
    %c1_37 = arith.constant 1 : index
    %c0_38 = arith.constant 0 : index
    %c0_39 = arith.constant 0 : index
    %c0_40 = arith.constant 0 : index
    %97 = vector.load %arg3[%c1_37, %c0_38, %c0_39, %c0_40] : memref<2x3x8x128xf32, #tpu.memory_space<vmem>>, vector<1x1x8x128xf32>
    %98 = vector.shape_cast %97 : vector<1x1x8x128xf32> to vector<8x128xf32>
    %c1_41 = arith.constant 1 : index
    %c1_42 = arith.constant 1 : index
    %c0_43 = arith.constant 0 : index
    %c0_44 = arith.constant 0 : index
    %99 = vector.load %arg3[%c1_41, %c1_42, %c0_43, %c0_44] : memref<2x3x8x128xf32, #tpu.memory_space<vmem>>, vector<1x1x8x128xf32>
    %100 = vector.shape_cast %99 : vector<1x1x8x128xf32> to vector<8x128xf32>
    %c1_45 = arith.constant 1 : index
    %c2_46 = arith.constant 2 : index
    %c0_47 = arith.constant 0 : index
    %c0_48 = arith.constant 0 : index
    %101 = vector.load %arg3[%c1_45, %c2_46, %c0_47, %c0_48] : memref<2x3x8x128xf32, #tpu.memory_space<vmem>>, vector<1x1x8x128xf32>
    %102 = vector.shape_cast %101 : vector<1x1x8x128xf32> to vector<8x128xf32>
    %103 = vector.broadcast %74 : f32 to vector<8x128xf32>
    %104 = arith.mulf %98, %103 : vector<8x128xf32>
    %105 = vector.broadcast %80 : f32 to vector<8x128xf32>
    %106 = arith.mulf %100, %105 : vector<8x128xf32>
    %107 = arith.addf %104, %106 : vector<8x128xf32>
    %108 = vector.broadcast %86 : f32 to vector<8x128xf32>
    %109 = arith.mulf %102, %108 : vector<8x128xf32>
    %110 = arith.addf %107, %109 : vector<8x128xf32>
    %111 = vector.broadcast %92 : f32 to vector<8x128xf32>
    %112 = arith.addf %110, %111 : vector<8x128xf32>
    %113 = vector.broadcast %76 : f32 to vector<8x128xf32>
    %114 = arith.mulf %98, %113 : vector<8x128xf32>
    %115 = vector.broadcast %82 : f32 to vector<8x128xf32>
    %116 = arith.mulf %100, %115 : vector<8x128xf32>
    %117 = arith.addf %114, %116 : vector<8x128xf32>
    %118 = vector.broadcast %88 : f32 to vector<8x128xf32>
    %119 = arith.mulf %102, %118 : vector<8x128xf32>
    %120 = arith.addf %117, %119 : vector<8x128xf32>
    %121 = vector.broadcast %94 : f32 to vector<8x128xf32>
    %122 = arith.addf %120, %121 : vector<8x128xf32>
    %123 = vector.broadcast %78 : f32 to vector<8x128xf32>
    %124 = arith.mulf %98, %123 : vector<8x128xf32>
    %125 = vector.broadcast %84 : f32 to vector<8x128xf32>
    %126 = arith.mulf %100, %125 : vector<8x128xf32>
    %127 = arith.addf %124, %126 : vector<8x128xf32>
    %128 = vector.broadcast %90 : f32 to vector<8x128xf32>
    %129 = arith.mulf %102, %128 : vector<8x128xf32>
    %130 = arith.addf %127, %129 : vector<8x128xf32>
    %131 = vector.broadcast %96 : f32 to vector<8x128xf32>
    %132 = arith.addf %130, %131 : vector<8x128xf32>
    %c1_49 = arith.constant 1 : index
    %c0_50 = arith.constant 0 : index
    %c0_51 = arith.constant 0 : index
    %c0_52 = arith.constant 0 : index
    %133 = vector.load %arg4[%c1_49, %c0_50, %c0_51, %c0_52] : memref<2x3x8x128xf32, #tpu.memory_space<vmem>>, vector<1x1x8x128xf32>
    %134 = vector.shape_cast %133 : vector<1x1x8x128xf32> to vector<8x128xf32>
    %135 = vector.shape_cast %112 : vector<8x128xf32> to vector<1x1x8x128xf32>
    tpu.vector_store %arg4[%c1_49, %c0_50, %c0_51, %c0_52], %135 {strides = array<i32>} : memref<2x3x8x128xf32, #tpu.memory_space<vmem>>, vector<1x1x8x128xf32>,
    %c1_53 = arith.constant 1 : index
    %c1_54 = arith.constant 1 : index
    %c0_55 = arith.constant 0 : index
    %c0_56 = arith.constant 0 : index
    %136 = vector.load %arg4[%c1_53, %c1_54, %c0_55, %c0_56] : memref<2x3x8x128xf32, #tpu.memory_space<vmem>>, vector<1x1x8x128xf32>
    %137 = vector.shape_cast %136 : vector<1x1x8x128xf32> to vector<8x128xf32>
    %138 = vector.shape_cast %122 : vector<8x128xf32> to vector<1x1x8x128xf32>
    tpu.vector_store %arg4[%c1_53, %c1_54, %c0_55, %c0_56], %138 {strides = array<i32>} : memref<2x3x8x128xf32, #tpu.memory_space<vmem>>, vector<1x1x8x128xf32>,
    %c1_57 = arith.constant 1 : index
    %c2_58 = arith.constant 2 : index
    %c0_59 = arith.constant 0 : index
    %c0_60 = arith.constant 0 : index
    %139 = vector.load %arg4[%c1_57, %c2_58, %c0_59, %c0_60] : memref<2x3x8x128xf32, #tpu.memory_space<vmem>>, vector<1x1x8x128xf32>
    %140 = vector.shape_cast %139 : vector<1x1x8x128xf32> to vector<8x128xf32>
    %141 = vector.shape_cast %132 : vector<8x128xf32> to vector<1x1x8x128xf32>
    tpu.vector_store %arg4[%c1_57, %c2_58, %c0_59, %c0_60], %141 {strides = array<i32>} : memref<2x3x8x128xf32, #tpu.memory_space<vmem>>, vector<1x1x8x128xf32>,
    return
  }
  func.func @transform_0(%arg0: i32, %arg1: i32) -> (i32, i32) {
    %c0_i32 = arith.constant 0 : i32
    %c0_i32_0 = arith.constant 0 : i32
    %c0_i32_1 = arith.constant 0 : i32
    return %c0_i32, %c0_i32_0 : i32, i32
  }
  func.func @transform_1(%arg0: i32, %arg1: i32) -> (i32, i32, i32, i32) {
    %c0_i32 = arith.constant 0 : i32
    %c0_i32_0 = arith.constant 0 : i32
    %c0_i32_1 = arith.constant 0 : i32
    return %arg0, %c0_i32, %arg1, %c0_i32_0 : i32, i32, i32, i32
  }
  func.func @transform_2(%arg0: i32, %arg1: i32) -> (i32, i32, i32, i32) {
    %c0_i32 = arith.constant 0 : i32
    %c0_i32_0 = arith.constant 0 : i32
    %c0_i32_1 = arith.constant 0 : i32
    return %arg0, %c0_i32, %arg1, %c0_i32_0 : i32, i32, i32, i32
  }
}

</mosaic_0001>

<bundles_post_ra>
// kernel: tpu_custom_call.1
= control target key start
LH: loop header
LB: loop body
LE: loop exit
PB: predicated region body
PF: predicated region fallthrough
CT: control target
= control target key end

     0   :  { %7 = vsyncpa [#allocation5], 0  ;;  %s391_s0 = inlined_call_operand.hbm [shape: f32[2,16], index: 0, kind: input, shape index: {}]   ;;  %s392_s1 = inlined_call_operand.hbm [shape: f32[2,3,8,128], index: 1, kind: input, shape index: {}]   ;;  %s393_s2 = inlined_call_operand.hbm [shape: f32[2,3,8,128], index: 2, kind: output, shape index: {}]  }
   0x1   :  { %8 = vsyncpa [#allocation3], 0 }
   0x2   :  { %9 = vsyncpa [#allocation4], 0  ;;  %s215_s11 = scalar_lea.hbm %s391_s0, 32 }
   0x3   :  { %p216_p0 = scmp.ne.s32.totalorder %s391_s0, %s215_s11  ;;  %p219_p1 = scmp.lt.u32.totalorder %s215_s11, %s391_s0 }
   0x5   :  { %p221_p2 = pnand %p219_p1, %p216_p0 }
   0x7   :  { %224 = shalt.err (!%p221_p2)
}
   0x8   :  { %s275_s16 = smov [#allocation2]   ;;  %s276_s19 = smov [#allocation6]  }
   0x9   :  { %17 = dma.hbm_to_smem %s391_s0, 32, %s275_s16, [#allocation5]  }
   0xa   :  { %s23_s20 = sshll.u32 %s276_s19, 4  ;;  %s225_s23 = scalar_lea.hbm %s392_s1, 768  ;;  %s24_s20 = int_to_ptr.vmem [resolvable:$true] %s23_s20 }
   0xb   :  { %p226_p3 = scmp.ne.s32.totalorder %s392_s1, %s225_s23  ;;  %p229_p4 = scmp.lt.u32.totalorder %s225_s23, %s392_s1 }
   0xd   :  { %p231_p5 = pnand %p229_p4, %p226_p3 }
   0xf   :  { %234 = shalt.err (!%p231_p5)
}
  0x10   :  { %s235_s28 = scalar_lea.vmem %s24_s20, 768  ;;  %p240_p7 = scmp.lt.s32.totalorder %s24_s20, %s24_s20 }
  0x11   :  { %p236_p6 = scmp.ne.s32.totalorder %s24_s20, %s235_s28  ;;  %p241_p8 = scmp.lt.s32.totalorder %s235_s28, %s235_s28 }
  0x13   :  { %p242_p9 = por %p241_p8, %p240_p7 }
  0x15   :  { %p243_p10 = pnand %p242_p9, %p236_p6 }
  0x17   :  { %246 = shalt.err (!%p243_p10)
}
  0x18   :  { %s277_s0 = smov 128   ;;  %s278_s29 = smov 8  }
  0x19   :  { %29 = dma.hbm_to_vmem [thread:$0]  %s392_s1, 768, %s24_s20, [#allocation3], %s277_s0, %s277_s0, %s278_s29  }
  0x1a   :  { %269 = dma.done.wait [#allocation5], 32  }
  0x1b   :  { %270 = vsyncadd [#allocation5], 4294967264 }
  0x1c   :  { %271 = dma.done.wait [#allocation3], 768  }
  0x1d   :  { %272 = vsyncadd [#allocation3], 4294966528 }
  0x1e   :  { %36 = sfence }
  0x1f   :  { %s39_s4 = sld [smem:[#allocation2]]  ;;  %s189_s5 = sld [smem:[#allocation2 + $0x4]]  ;;  %v62_v0 = vld [vmem:[#allocation6] sm:$0xff]  ;;  %v64_v1 = vld [vmem:[#allocation6 + $0x8] sm:$0xff]  ;;  %v66_v2 = vld [vmem:[#allocation6 + $0x10] sm:$0xff] }
  0x20   :  { %s192_s6 = sld [smem:[#allocation2 + $0x8]]  ;;  %s322_s7 = sld [smem:[#allocation2 + $0xc]]  ;;  %v128_v23 = vld [vmem:[#allocation6 + $0x18] sm:$0xff]  ;;  %v130_v24 = vld [vmem:[#allocation6 + $0x20] sm:$0xff]  ;;  %v132_v27 = vld [vmem:[#allocation6 + $0x28] sm:$0xff] }
  0x21   :  { %s187_s8 = sld [smem:[#allocation2 + $0x1]]  ;;  %s190_s9 = sld [smem:[#allocation2 + $0x5]] }
  0x22   :  { %s193_s10 = sld [smem:[#allocation2 + $0x9]]  ;;  %s324_s11 = sld [smem:[#allocation2 + $0xd]] }
  0x23   :  { %s326_s12 = sld [smem:[#allocation2 + $0x2]]  ;;  %s328_s1 = sld [smem:[#allocation2 + $0x6]] }
  0x24   :  { %s330_s13 = sld [smem:[#allocation2 + $0xa]]  ;;  %s332_s14 = sld [smem:[#allocation2 + $0xe]] }
  0x25   :  { %v67_v3 = vstv %s39_s4  ;;  %v69_v4 = vstv %s189_s5  ;;  %s334_s15 = sld [smem:[#allocation2 + $0x80]]  ;;  %s336_s16 = sld [smem:[#allocation2 + $0x84]] }
  0x26   :  { %v68_v5 = vmul.f32 %v67_v3, %v62_v0  ;;  %v70_v6 = vmul.f32 %v69_v4, %v64_v1  ;;  %v72_v7 = vstv %s192_s6  ;;  %s338_s17 = sld [smem:[#allocation2 + $0x88]]  ;;  %s340_s18 = sld [smem:[#allocation2 + $0x81]]  ;;  %v75_v15 = vstv %s322_s7 }
  0x27   :  { %v73_v8 = vmul.f32 %v72_v7, %v66_v2  ;;  %v77_v9 = vstv %s187_s8  ;;  %v79_v10 = vstv %s190_s9  ;;  %s342_s19 = sld [smem:[#allocation2 + $0x85]]  ;;  %s344_s20 = sld [smem:[#allocation2 + $0x8c]] }
  0x28   :  { %v71_v11 = vadd.f32 %v70_v6, %v68_v5  ;;  %v78_v12 = vmul.f32 %v77_v9, %v62_v0  ;;  %v80_v13 = vmul.f32 %v79_v10, %v64_v1  ;;  %v82_v14 = vstv %s193_s10  ;;  %s346_s21 = sld [smem:[#allocation2 + $0x89]]  ;;  %s351_s22 = sld [smem:[#allocation2 + $0x82]] }
  0x29   :  { %v83_v16 = vmul.f32 %v82_v14, %v66_v2  ;;  %v87_v17 = vstv %s326_s12  ;;  %v89_v18 = vstv %s328_s1  ;;  %s353_s23 = sld [smem:[#allocation2 + $0x86]]  ;;  %s355_s24 = sld [smem:[#allocation2 + $0x8a]]  ;;  %v85_v25 = vstv %s324_s11 }
  0x2a   :  { %v74_v19 = vadd.f32 %v73_v8, %v71_v11  ;;  %v81_v20 = vadd.f32 %v80_v13, %v78_v12  ;;  %v88_v21 = vmul.f32 %v87_v17, %v62_v0  ;;  %v90_v22 = vmul.f32 %v89_v18, %v64_v1  ;;  %s361_s25 = sld [smem:[#allocation2 + $0x8d]]  ;;  %s365_s26 = sld [smem:[#allocation2 + $0x8e]] }
  0x2b   :  { %v92_v26 = vstv %s330_s13  ;;  %v133_v28 = vstv %s334_s15  ;;  %v135_v29 = vstv %s336_s16  ;;  %v95_v34 = vstv %s332_s14  ;;  %s279_s27 = smov [#allocation7]  }
  0x2c   :  { %v76_v30 = vadd.f32 %v75_v15, %v74_v19  ;;  %v84_v31 = vadd.f32 %v83_v16, %v81_v20  ;;  %v91_v32 = vadd.f32 %v90_v22, %v88_v21  ;;  %v93_v33 = vmul.f32 %v92_v26, %v66_v2  ;;  %s174_s28 = sshll.u32 %s279_s27, 4  ;;  %s175_s28 = int_to_ptr.vmem [resolvable:$true] %s174_s28 }
  0x2d   :  { %v134_v35 = vmul.f32 %v133_v28, %v128_v23  ;;  %v136_v36 = vmul.f32 %v135_v29, %v130_v24  ;;  %v138_v37 = vstv %s338_s17  ;;  %v143_v41 = vstv %s340_s18  ;;  %s247_s30 = scalar_lea.vmem %s175_s28, 768  ;;  %p252_p12 = scmp.lt.s32.totalorder %s175_s28, %s175_s28 }
  0x2e   :  { %97 = vst [vmem:[#allocation7] sm:$0xff] %v76_v30  ;;  %v86_v38 = vadd.f32 %v85_v25, %v84_v31  ;;  %v94_v39 = vadd.f32 %v93_v33, %v91_v32  ;;  %v139_v40 = vmul.f32 %v138_v37, %v132_v27  ;;  %v144_v43 = vmul.f32 %v143_v41, %v128_v23  ;;  %p248_p11 = scmp.ne.s32.totalorder %s175_s28, %s247_s30  ;;  %p253_p13 = scmp.lt.s32.totalorder %s247_s30, %s247_s30 }
  0x2f   :  { %v137_v42 = vadd.f32 %v136_v36, %v134_v35  ;;  %v145_v44 = vstv %s342_s19  ;;  %v148_v45 = vstv %s346_s21  ;;  %v141_v47 = vstv %s344_s20 }
  0x30   :  { %99 = vst [vmem:[#allocation7 + $0x8] sm:$0xff] %v86_v38  ;;  %v96_v46 = vadd.f32 %v95_v34, %v94_v39  ;;  %v146_v48 = vmul.f32 %v145_v44, %v130_v24  ;;  %v149_v49 = vmul.f32 %v148_v45, %v132_v27  ;;  %v153_v51 = vstv %s351_s22  ;;  %p254_p0 = por %p253_p13, %p252_p12 }
  0x31   :  { %v140_v50 = vadd.f32 %v139_v40, %v137_v42  ;;  %v155_v52 = vstv %s353_s23  ;;  %v158_v53 = vstv %s355_s24  ;;  %v154_v55 = vmul.f32 %v153_v51, %v128_v23 }
  0x32   :  { %101 = vst [vmem:[#allocation7 + $0x10] sm:$0xff] %v96_v46  ;;  %v147_v54 = vadd.f32 %v146_v48, %v144_v43  ;;  %v156_v56 = vmul.f32 %v155_v52, %v130_v24  ;;  %v159_v57 = vmul.f32 %v158_v53, %v132_v27  ;;  %v151_v59 = vstv %s361_s25  ;;  %p255_p1 = pnand %p254_p0, %p248_p11 }
  0x33   :  { %v142_v58 = vadd.f32 %v141_v47, %v140_v50  ;;  %v161_v62 = vstv %s365_s26 }
  0x34   :  { %v150_v60 = vadd.f32 %v149_v49, %v147_v54  ;;  %v157_v61 = vadd.f32 %v156_v56, %v154_v55 }
  0x35   :  { %164 = vst [vmem:[#allocation7 + $0x18] sm:$0xff] %v142_v58 }
  0x36   :  { %v152_v63 = vadd.f32 %v151_v59, %v150_v60  ;;  %v160_v0 = vadd.f32 %v159_v57, %v157_v61 }
  0x38   :  { %166 = vst [vmem:[#allocation7 + $0x20] sm:$0xff] %v152_v63  ;;  %v162_v1 = vadd.f32 %v161_v62, %v160_v0 }
  0x3a   :  { %168 = vst [vmem:[#allocation7 + $0x28] sm:$0xff] %v162_v1 }
  0x3b   :  { %258 = shalt.err (!%p255_p1)
}
  0x3c   :  { %s259_s5 = scalar_lea.hbm %s393_s2, 768 }
  0x3d   :  { %p260_p2 = scmp.ne.s32.totalorder %s393_s2, %s259_s5  ;;  %p263_p3 = scmp.lt.u32.totalorder %s259_s5, %s393_s2 }
  0x3f   :  { %p265_p4 = pnand %p263_p3, %p260_p2 }
  0x41   :  { %268 = shalt.err (!%p265_p4)
}
  0x42   :  { %180 = dma.vmem_to_hbm [thread:$0]  %s175_s28, 768, %s393_s2, [#allocation4], %s277_s0, %s277_s0, %s278_s29  }
  0x43   :  { %273 = dma.done.wait [#allocation4], 768  }
  0x44   :  { %274 = vsyncadd [#allocation4], 4294966528 }
  0x45   :  { %184 = vsyncpa [#allocation3], 1 }
  0x46   :  { %185 = vsyncpa [#allocation4], 1 }
  0x47   :  { %186 = vsyncpa [#allocation5], 1 }

</bundles_post_ra>
